<compile_context>
chip_gen: v5e
topology: v5e:2x2
jax: 0.10.0
libtpu: 0.0.40
codegen_flags: <defaults>
</compile_context>

<pallas_src>
import functools

import jax
import jax.numpy as jnp
import numpy as np
from jax.experimental import pallas as pl
from jax.experimental.pallas import tpu as pltpu


def _loss_kernel(pose_ref, cam_ref,                      # SMEM: (Bp, 7), (Bp, 5)
                 pd3_ref, gt3_ref, unc_ref, val_ref, xys_ref,   # VMEM tiles
                 l1_out, l2_out, unc_out,                # (1, 1) outputs
                 l1_acc, l2_acc, unc_acc,                # (S, 128) VMEM accumulators
                 *, bt, s, n_real, inv_b, inv_nb, point_pad):
    i = pl.program_id(0)
    nb = pl.num_programs(0)

    @pl.when(i == 0)
    def _():
        l1_acc[...] = jnp.zeros_like(l1_acc)
        l2_acc[...] = jnp.zeros_like(l2_acc)
        unc_acc[...] = jnp.zeros_like(unc_acc)

    # Mask for point padding (lanes/sublanes beyond the real N points).
    if point_pad:
        sub = jax.lax.broadcasted_iota(jnp.int32, (s, 128), 0)
        lane = jax.lax.broadcasted_iota(jnp.int32, (s, 128), 1)
        in_range = (sub * 128 + lane) < n_real
    else:
        in_range = None

    l1_p = None
    l2_p = None
    unc_p = None

    # Statically unrolled loop over the Bt batch elements of this block.
    for b in range(bt):
        bidx = i * bt + b        # absolute (padded) batch index for SMEM scalars

        p0 = pd3_ref[b, 0]       # (S, 128) predicted 3D coords, per channel
        p1 = pd3_ref[b, 1]
        p2 = pd3_ref[b, 2]
        g0 = gt3_ref[b, 0]       # (S, 128) ground-truth 3D coords
        g1 = gt3_ref[b, 1]
        g2 = gt3_ref[b, 2]
        vb = val_ref[b]          # (S, 128) valid mask (p3D_ids)
        ub = unc_ref[b]          # (S, 128) predicted uncertainty
        gx = xys_ref[b, 0]       # (S, 128) ground-truth x
        gy = xys_ref[b, 1]       # (S, 128) ground-truth y

        # --- l1: valids * ||pd - gt||  (explicit per-channel math, no axis reduce) ---
        d0 = p0 - g0
        d1 = p1 - g1
        d2 = p2 - g2
        l1_c = vb * jnp.sqrt(d0 * d0 + d1 * d1 + d2 * d2)

        # --- uncertainty: (valids - unc)^2 (sqrt of the total at finalize) ---
        du = vb - ub
        unc_c = du * du

        # --- l2: reprojection error for this batch element ---
        tx = pose_ref[bidx, 0]
        ty = pose_ref[bidx, 1]
        tz = pose_ref[bidx, 2]
        q0 = pose_ref[bidx, 3]
        q1 = pose_ref[bidx, 4]
        q2 = pose_ref[bidx, 5]
        q3 = pose_ref[bidx, 6]
        f = cam_ref[bidx, 2]
        ppx = cam_ref[bidx, 3]
        ppy = cam_ref[bidx, 4]

        # qvec2rotmat (same formula as the PyTorch reference, no normalization)
        r00 = 1.0 - 2.0 * q2 * q2 - 2.0 * q3 * q3
        r01 = 2.0 * q1 * q2 - 2.0 * q0 * q3
        r02 = 2.0 * q3 * q1 + 2.0 * q0 * q2
        r10 = 2.0 * q1 * q2 + 2.0 * q0 * q3
        r11 = 1.0 - 2.0 * q1 * q1 - 2.0 * q3 * q3
        r12 = 2.0 * q2 * q3 - 2.0 * q0 * q1
        r20 = 2.0 * q3 * q1 - 2.0 * q0 * q2
        r21 = 2.0 * q2 * q3 + 2.0 * q0 * q1
        r22 = 1.0 - 2.0 * q1 * q1 - 2.0 * q2 * q2

        pr0 = r00 * p0 + r01 * p1 + r02 * p2 + tx
        pr1 = r10 * p0 + r11 * p1 + r12 * p2 + ty
        pr2 = r20 * p0 + r21 * p1 + r22 * p2 + tz
        if in_range is not None:
            # Keep padded points finite (their valids are 0 so they contribute 0).
            pr2 = jnp.where(in_range, pr2, 1.0)

        inv = pl.reciprocal(pr2)            # one reciprocal instead of two divides
        px = f * pr0 * inv + ppx
        py = f * pr1 * inv + ppy
        ex = gx - px
        ey = gy - py
        l2_c = vb * jnp.sqrt(ex * ex + ey * ey)

        l1_p = l1_c if l1_p is None else l1_p + l1_c
        l2_p = l2_c if l2_p is None else l2_p + l2_c
        unc_p = unc_c if unc_p is None else unc_p + unc_c

    # One wide elementwise accumulate per grid step (no reductions, no narrow stores).
    l1_acc[...] += l1_p
    l2_acc[...] += l2_p
    unc_acc[...] += unc_p

    # --- finalize: single cross-lane reduce + all normalization on the last step ---
    @pl.when(i == nb - 1)
    def _():
        l1_out[...] = jnp.sum(l1_acc[...], keepdims=True) * inv_b
        l2_out[...] = jnp.sum(l2_acc[...], keepdims=True) * inv_nb
        unc_out[...] = jnp.sqrt(jnp.sum(unc_acc[...], keepdims=True)) * inv_b


def criterion_forward(coord_pd0, coord_pd1, p3Ds, xys, pose, camera, valids, epoch,
                      *, bt_max=8):
    """Pallas implementation of _3DFLCriterion.forward.

    coord_pd0 : (B, 3, N) predicted 3D points
    coord_pd1 : (B, N)    predicted uncertainty
    p3Ds      : (B, 3, N) ground-truth 3D points
    xys       : (B, N, 2) ground-truth 2D keypoints
    pose      : (B, 7)    [tx, ty, tz, qw, qx, qy, qz]
    camera    : (B, 5)    [w, h, f, ppx, ppy]
    valids    : (B, N)    valid mask (p3D_ids)
    """
    B, C, N = coord_pd0.shape
    assert C == 3
    f32 = jnp.float32

    # --- tiling parameters ---
    S = pl.cdiv(N, 128)                  # sublane rows per point set
    n_pad = S * 128
    per_elem_bytes = 10 * S * 128 * 4    # 40 bytes/point across the 5 inputs
    vmem_budget = 16 * 1024 * 1024       # conservative (v7x has 64 MiB physical VMEM)
    bt_fit = max(1, vmem_budget // (2 * per_elem_bytes))
    bt = int(min(B, bt_max, bt_fit))
    nb = pl.cdiv(B, bt)                  # grid size
    b_pad = nb * bt

    # TODO(synk): have the upstream producer emit xys channel-first so this
    # re-layout (transpose) disappears from the HBM traffic entirely.
    xys_cf = jnp.transpose(xys, (0, 2, 1))           # (B, 2, N)

    def pad_points(x):
        if n_pad == N and b_pad == B:
            return x
        pads = [(0, 0)] * x.ndim
        pads[0] = (0, b_pad - B)
        pads[-1] = (0, n_pad - N)
        return jnp.pad(x, pads)

    pd3_p = pad_points(coord_pd0.astype(f32)).reshape(b_pad, 3, S, 128)
    gt3_p = pad_points(p3Ds.astype(f32)).reshape(b_pad, 3, S, 128)
    unc_p = pad_points(coord_pd1.astype(f32)).reshape(b_pad, S, 128)
    val_p = pad_points(valids.astype(f32)).reshape(b_pad, S, 128)
    xys_p = pad_points(xys_cf.astype(f32)).reshape(b_pad, 2, S, 128)

    pose_f = pose.astype(f32)
    cam_f = camera.astype(f32)
    if b_pad != B:
        # Padded batch elements: identity-ish pose with tz=1, f=1 -> finite
        # projection; their valids are 0 so they contribute exactly nothing.
        pose_fill = jnp.tile(jnp.array([[0.0, 0.0, 1.0, 1.0, 0.0, 0.0, 0.0]], f32),
                             (b_pad - B, 1))
        cam_fill = jnp.tile(jnp.array([[1.0, 1.0, 1.0, 0.0, 0.0]], f32),
                            (b_pad - B, 1))
        pose_f = jnp.concatenate([pose_f, pose_fill], axis=0)
        cam_f = jnp.concatenate([cam_f, cam_fill], axis=0)

    kernel = functools.partial(
        _loss_kernel,
        bt=bt, s=S, n_real=N,
        inv_b=1.0 / float(B),
        inv_nb=1.0 / float(N * B),
        point_pad=(n_pad != N),
    )

    l1, l2, uncl = pl.pallas_call(
        kernel,
        out_shape=(
            jax.ShapeDtypeStruct((1, 1), f32),
            jax.ShapeDtypeStruct((1, 1), f32),
            jax.ShapeDtypeStruct((1, 1), f32),
        ),
        grid_spec=pltpu.PrefetchScalarGridSpec(
            num_scalar_prefetch=0,
            grid=(nb,),
            in_specs=[
                pl.BlockSpec(memory_space=pltpu.MemorySpace.SMEM),       # pose
                pl.BlockSpec(memory_space=pltpu.MemorySpace.SMEM),       # camera
                pl.BlockSpec((bt, 3, S, 128), lambda ib: (ib, 0, 0, 0)),  # coord_pd0
                pl.BlockSpec((bt, 3, S, 128), lambda ib: (ib, 0, 0, 0)),  # p3Ds
                pl.BlockSpec((bt, S, 128), lambda ib: (ib, 0, 0)),        # uncertainty
                pl.BlockSpec((bt, S, 128), lambda ib: (ib, 0, 0)),        # valids
                pl.BlockSpec((bt, 2, S, 128), lambda ib: (ib, 0, 0, 0)),  # xys (ch-first)
            ],
            out_specs=(
                pl.BlockSpec((1, 1), lambda ib: (0, 0)),
                pl.BlockSpec((1, 1), lambda ib: (0, 0)),
                pl.BlockSpec((1, 1), lambda ib: (0, 0)),
            ),
            scratch_shapes=[
                pltpu.VMEM((S, 128), f32),
                pltpu.VMEM((S, 128), f32),
                pltpu.VMEM((S, 128), f32),
            ],
        ),
        compiler_params=pltpu.CompilerParams(dimension_semantics=("arbitrary",)),
    )(pose_f, cam_f, pd3_p, gt3_p, unc_p, val_p, xys_p)

    l1 = l1[0, 0]
    l2 = l2[0, 0]
    uncl = uncl[0, 0]
    total = jnp.where(jnp.asarray(epoch) >= 500, l1 + uncl + 10.0 * l2, l1 + uncl)
    return total, l1, l2, uncl


def _reference_forward(coord_pd0, coord_pd1, p3Ds, xys, pose, camera, valids, epoch):
    """Plain-JAX mirror of the PyTorch module, for validation."""
    B = coord_pd0.shape[0]
    se = jnp.linalg.norm(coord_pd0 - p3Ds, axis=1)               # (B, N)
    l1 = jnp.sum(valids * se) / B
    unc = jnp.sum(jnp.linalg.norm(valids - coord_pd1)) / B
    l2 = 0.0
    for i in range(B):
        q = pose[i, 3:]
        R = jnp.array([
            [1 - 2 * q[2] ** 2 - 2 * q[3] ** 2, 2 * q[1] * q[2] - 2 * q[0] * q[3], 2 * q[3] * q[1] + 2 * q[0] * q[2]],
            [2 * q[1] * q[2] + 2 * q[0] * q[3], 1 - 2 * q[1] ** 2 - 2 * q[3] ** 2, 2 * q[2] * q[3] - 2 * q[0] * q[1]],
            [2 * q[3] * q[1] - 2 * q[0] * q[2], 2 * q[2] * q[3] + 2 * q[0] * q[1], 1 - 2 * q[1] ** 2 - 2 * q[2] ** 2],
        ])
        t = pose[i, :3][:, None]
        f, ppx, ppy = camera[i, 2], camera[i, 3], camera[i, 4]
        prd = R @ coord_pd0[i] + t
        px = f * prd[0] / prd[2] + ppx
        py = f * prd[1] / prd[2] + ppy
        ex = (xys[i, :, 0] - px) ** 2
        ey = (xys[i, :, 1] - py) ** 2
        l2 = l2 + jnp.mean(valids[i] * jnp.sqrt(ex + ey))
    l2 = l2 / B
    total = l1 + unc + 10.0 * l2 if epoch >= 500 else l1 + unc
    return total, l1, l2, unc


def _make_inputs(key, B, N):
    k1, k2, k3, k4, k5, k6 = jax.random.split(key, 6)
    coord_pd0 = jax.random.uniform(k1, (B, 3, N), jnp.float32)           # predicted 3D pts
    coord_pd1 = jax.random.uniform(k2, (B, N), jnp.float32)              # predicted uncertainty
    p3Ds = jax.random.uniform(k3, (B, 3, N), jnp.float32)                # gt 3D points
    valids = (jax.random.uniform(k4, (B, N)) > 0.3).astype(jnp.float32)  # p3D_ids mask
    xys = jax.random.uniform(k5, (B, N, 2), jnp.float32) * 128.0         # gt 2D keypoints
    q = jax.random.normal(k6, (B, 4), jnp.float32)
    q = q / jnp.linalg.norm(q, axis=1, keepdims=True)
    t = jnp.tile(jnp.array([[0.1, -0.2, 5.0]], jnp.float32), (B, 1))     # keep depth > 0
    pose = jnp.concatenate([t, q], axis=1)                               # (B, 7)
    camera = jnp.tile(jnp.array([[128.0, 128.0, 100.0, 64.0, 64.0]], jnp.float32), (B, 1))
    return coord_pd0, coord_pd1, p3Ds, xys, pose, camera, valids


if __name__ == "__main__":
    key = jax.random.PRNGKey(0)
    epoch = 600  # exercise the epoch >= 500 branch

    # (B, N, bt_max): exercise single-step, multi-step accumulation,
    # point padding (200 -> 256) and batch padding (5 -> 6) paths.
    checks = [
        (2, 200, 8),
        (2, 200, 1),
        (5, 256, 2),
    ]
    for idx, (B, N, bt_max) in enumerate(checks):
        args = _make_inputs(jax.random.fold_in(key, idx), B, N)
        out = criterion_forward(*args, epoch, bt_max=bt_max)
        out = jax.block_until_ready(out)
        ref = _reference_forward(*args, epoch)
        np.testing.assert_allclose(
            np.array([float(x) for x in out]),
            np.array([float(x) for x in ref]),
            rtol=1e-4, atol=1e-4)

    print("KERNEL_OK")
</pallas_src>

<mosaic_0001>
module attributes {stable_mosaic.version = 11 : i64} {
  func.func @_loss_kernel(%arg0: i32, %arg1: memref<2x7xf32, #tpu.memory_space<smem>>, %arg2: memref<2x5xf32, #tpu.memory_space<smem>>, %arg3: memref<2x3x2x128xf32, #tpu.memory_space<vmem>>, %arg4: memref<2x3x2x128xf32, #tpu.memory_space<vmem>>, %arg5: memref<2x2x128xf32, #tpu.memory_space<vmem>>, %arg6: memref<2x2x128xf32, #tpu.memory_space<vmem>>, %arg7: memref<2x2x2x128xf32, #tpu.memory_space<vmem>>, %arg8: memref<1x1xf32, #tpu.memory_space<vmem>>, %arg9: memref<1x1xf32, #tpu.memory_space<vmem>>, %arg10: memref<1x1xf32, #tpu.memory_space<vmem>>, %arg11: memref<2x128xf32, #tpu.memory_space<vmem>>, %arg12: memref<2x128xf32, #tpu.memory_space<vmem>>, %arg13: memref<2x128xf32, #tpu.memory_space<vmem>>) attributes {dimension_semantics = [#tpu.dimension_semantics<arbitrary>], iteration_bounds = array<i64: 1>, scalar_prefetch = 0 : i64, scratch_operands = 3 : i64, tpu.core_type = #tpu.core_type<tc>, window_params = [{transform_indices = @transform_0, window_bounds = array<i64: 2, 7>}, {transform_indices = @transform_1, window_bounds = array<i64: 2, 5>}, {transform_indices = @transform_2, window_bounds = array<i64: 2, 3, 2, 128>}, {transform_indices = @transform_3, window_bounds = array<i64: 2, 3, 2, 128>}, {transform_indices = @transform_4, window_bounds = array<i64: 2, 2, 128>}, {transform_indices = @transform_5, window_bounds = array<i64: 2, 2, 128>}, {transform_indices = @transform_6, window_bounds = array<i64: 2, 2, 2, 128>}, {pipeline_mode = #tpu.pipeline_mode<synchronous>, transform_indices = @transform_7, window_bounds = array<i64: 1, 1>}, {pipeline_mode = #tpu.pipeline_mode<synchronous>, transform_indices = @transform_8, window_bounds = array<i64: 1, 1>}, {pipeline_mode = #tpu.pipeline_mode<synchronous>, transform_indices = @transform_9, window_bounds = array<i64: 1, 1>}]} {
    %c0_i32 = arith.constant 0 : i32
    %0 = arith.cmpi eq, %arg0, %c0_i32 : i32
    %1 = arith.extui %0 : i1 to i32
    %c0_i32_0 = arith.constant 0 : i32
    %2 = arith.cmpi ne, %1, %c0_i32_0 : i32
    scf.if %2 {
      %cst_149 = arith.constant 0.000000e+00 : f32
      %329 = vector.broadcast %cst_149 : f32 to vector<2x128xf32>
      %c0_150 = arith.constant 0 : index
      %c0_151 = arith.constant 0 : index
      %330 = vector.load %arg11[%c0_150, %c0_151] : memref<2x128xf32, #tpu.memory_space<vmem>>, vector<2x128xf32>
      tpu.vector_store %arg11[%c0_150, %c0_151], %329 {strides = array<i32>} : memref<2x128xf32, #tpu.memory_space<vmem>>, vector<2x128xf32>,
      %cst_152 = arith.constant 0.000000e+00 : f32
      %331 = vector.broadcast %cst_152 : f32 to vector<2x128xf32>
      %c0_153 = arith.constant 0 : index
      %c0_154 = arith.constant 0 : index
      %332 = vector.load %arg12[%c0_153, %c0_154] : memref<2x128xf32, #tpu.memory_space<vmem>>, vector<2x128xf32>
      tpu.vector_store %arg12[%c0_153, %c0_154], %331 {strides = array<i32>} : memref<2x128xf32, #tpu.memory_space<vmem>>, vector<2x128xf32>,
      %cst_155 = arith.constant 0.000000e+00 : f32
      %333 = vector.broadcast %cst_155 : f32 to vector<2x128xf32>
      %c0_156 = arith.constant 0 : index
      %c0_157 = arith.constant 0 : index
      %334 = vector.load %arg13[%c0_156, %c0_157] : memref<2x128xf32, #tpu.memory_space<vmem>>, vector<2x128xf32>
      tpu.vector_store %arg13[%c0_156, %c0_157], %333 {strides = array<i32>} : memref<2x128xf32, #tpu.memory_space<vmem>>, vector<2x128xf32>,
    } else {
    }
    %3 = tpu.iota {dimensions = array<i32: 0>} : vector<2x128xi32>
    %4 = tpu.iota {dimensions = array<i32: 1>} : vector<2x128xi32>
    %c128_i32 = arith.constant 128 : i32
    %5 = vector.broadcast %c128_i32 : i32 to vector<2x128xi32>
    %6 = arith.muli %3, %5 : vector<2x128xi32>
    %7 = arith.addi %6, %4 : vector<2x128xi32>
    %c200_i32 = arith.constant 200 : i32
    %8 = vector.broadcast %c200_i32 : i32 to vector<2x128xi32>
    %9 = arith.cmpi slt, %7, %8 : vector<2x128xi32>
    %c2_i32 = arith.constant 2 : i32
    %10 = arith.muli %arg0, %c2_i32 : i32
    %c0_i32_1 = arith.constant 0 : i32
    %11 = arith.addi %10, %c0_i32_1 : i32
    %c0 = arith.constant 0 : index
    %c0_2 = arith.constant 0 : index
    %c0_3 = arith.constant 0 : index
    %c0_4 = arith.constant 0 : index
    %12 = vector.load %arg3[%c0, %c0_2, %c0_3, %c0_4] : memref<2x3x2x128xf32, #tpu.memory_space<vmem>>, vector<1x1x2x128xf32>
    %13 = vector.shape_cast %12 : vector<1x1x2x128xf32> to vector<2x128xf32>
    %c0_5 = arith.constant 0 : index
    %c1 = arith.constant 1 : index
    %c0_6 = arith.constant 0 : index
    %c0_7 = arith.constant 0 : index
    %14 = vector.load %arg3[%c0_5, %c1, %c0_6, %c0_7] : memref<2x3x2x128xf32, #tpu.memory_space<vmem>>, vector<1x1x2x128xf32>
    %15 = vector.shape_cast %14 : vector<1x1x2x128xf32> to vector<2x128xf32>
    %c0_8 = arith.constant 0 : index
    %c2 = arith.constant 2 : index
    %c0_9 = arith.constant 0 : index
    %c0_10 = arith.constant 0 : index
    %16 = vector.load %arg3[%c0_8, %c2, %c0_9, %c0_10] : memref<2x3x2x128xf32, #tpu.memory_space<vmem>>, vector<1x1x2x128xf32>
    %17 = vector.shape_cast %16 : vector<1x1x2x128xf32> to vector<2x128xf32>
    %c0_11 = arith.constant 0 : index
    %c0_12 = arith.constant 0 : index
    %c0_13 = arith.constant 0 : index
    %c0_14 = arith.constant 0 : index
    %18 = vector.load %arg4[%c0_11, %c0_12, %c0_13, %c0_14] : memref<2x3x2x128xf32, #tpu.memory_space<vmem>>, vector<1x1x2x128xf32>
    %19 = vector.shape_cast %18 : vector<1x1x2x128xf32> to vector<2x128xf32>
    %c0_15 = arith.constant 0 : index
    %c1_16 = arith.constant 1 : index
    %c0_17 = arith.constant 0 : index
    %c0_18 = arith.constant 0 : index
    %20 = vector.load %arg4[%c0_15, %c1_16, %c0_17, %c0_18] : memref<2x3x2x128xf32, #tpu.memory_space<vmem>>, vector<1x1x2x128xf32>
    %21 = vector.shape_cast %20 : vector<1x1x2x128xf32> to vector<2x128xf32>
    %c0_19 = arith.constant 0 : index
    %c2_20 = arith.constant 2 : index
    %c0_21 = arith.constant 0 : index
    %c0_22 = arith.constant 0 : index
    %22 = vector.load %arg4[%c0_19, %c2_20, %c0_21, %c0_22] : memref<2x3x2x128xf32, #tpu.memory_space<vmem>>, vector<1x1x2x128xf32>
    %23 = vector.shape_cast %22 : vector<1x1x2x128xf32> to vector<2x128xf32>
    %c0_23 = arith.constant 0 : index
    %c0_24 = arith.constant 0 : index
    %c0_25 = arith.constant 0 : index
    %24 = vector.load %arg6[%c0_23, %c0_24, %c0_25] : memref<2x2x128xf32, #tpu.memory_space<vmem>>, vector<1x2x128xf32>
    %25 = vector.shape_cast %24 : vector<1x2x128xf32> to vector<2x128xf32>
    %c0_26 = arith.constant 0 : index
    %c0_27 = arith.constant 0 : index
    %c0_28 = arith.constant 0 : index
    %26 = vector.load %arg5[%c0_26, %c0_27, %c0_28] : memref<2x2x128xf32, #tpu.memory_space<vmem>>, vector<1x2x128xf32>
    %27 = vector.shape_cast %26 : vector<1x2x128xf32> to vector<2x128xf32>
    %c0_29 = arith.constant 0 : index
    %c0_30 = arith.constant 0 : index
    %c0_31 = arith.constant 0 : index
    %c0_32 = arith.constant 0 : index
    %28 = vector.load %arg7[%c0_29, %c0_30, %c0_31, %c0_32] : memref<2x2x2x128xf32, #tpu.memory_space<vmem>>, vector<1x1x2x128xf32>
    %29 = vector.shape_cast %28 : vector<1x1x2x128xf32> to vector<2x128xf32>
    %c0_33 = arith.constant 0 : index
    %c1_34 = arith.constant 1 : index
    %c0_35 = arith.constant 0 : index
    %c0_36 = arith.constant 0 : index
    %30 = vector.load %arg7[%c0_33, %c1_34, %c0_35, %c0_36] : memref<2x2x2x128xf32, #tpu.memory_space<vmem>>, vector<1x1x2x128xf32>
    %31 = vector.shape_cast %30 : vector<1x1x2x128xf32> to vector<2x128xf32>
    %32 = arith.subf %13, %19 : vector<2x128xf32>
    %33 = arith.subf %15, %21 : vector<2x128xf32>
    %34 = arith.subf %17, %23 : vector<2x128xf32>
    %35 = arith.mulf %32, %32 : vector<2x128xf32>
    %36 = arith.mulf %33, %33 : vector<2x128xf32>
    %37 = arith.addf %35, %36 : vector<2x128xf32>
    %38 = arith.mulf %34, %34 : vector<2x128xf32>
    %39 = arith.addf %37, %38 : vector<2x128xf32>
    %40 = math.sqrt %39 : vector<2x128xf32>
    %41 = arith.mulf %25, %40 : vector<2x128xf32>
    %42 = arith.subf %25, %27 : vector<2x128xf32>
    %43 = arith.mulf %42, %42 : vector<2x128xf32>
    %44 = arith.index_cast %11 : i32 to index
    %c0_37 = arith.constant 0 : index
    %45 = memref.load %arg1[%44, %c0_37] : memref<2x7xf32, #tpu.memory_space<smem>>
    %46 = arith.index_cast %11 : i32 to index
    %c1_38 = arith.constant 1 : index
    %47 = memref.load %arg1[%46, %c1_38] : memref<2x7xf32, #tpu.memory_space<smem>>
    %48 = arith.index_cast %11 : i32 to index
    %c2_39 = arith.constant 2 : index
    %49 = memref.load %arg1[%48, %c2_39] : memref<2x7xf32, #tpu.memory_space<smem>>
    %50 = arith.index_cast %11 : i32 to index
    %c3 = arith.constant 3 : index
    %51 = memref.load %arg1[%50, %c3] : memref<2x7xf32, #tpu.memory_space<smem>>
    %52 = arith.index_cast %11 : i32 to index
    %c4 = arith.constant 4 : index
    %53 = memref.load %arg1[%52, %c4] : memref<2x7xf32, #tpu.memory_space<smem>>
    %54 = arith.index_cast %11 : i32 to index
    %c5 = arith.constant 5 : index
    %55 = memref.load %arg1[%54, %c5] : memref<2x7xf32, #tpu.memory_space<smem>>
    %56 = arith.index_cast %11 : i32 to index
    %c6 = arith.constant 6 : index
    %57 = memref.load %arg1[%56, %c6] : memref<2x7xf32, #tpu.memory_space<smem>>
    %58 = arith.index_cast %11 : i32 to index
    %c2_40 = arith.constant 2 : index
    %59 = memref.load %arg2[%58, %c2_40] : memref<2x5xf32, #tpu.memory_space<smem>>
    %60 = arith.index_cast %11 : i32 to index
    %c3_41 = arith.constant 3 : index
    %61 = memref.load %arg2[%60, %c3_41] : memref<2x5xf32, #tpu.memory_space<smem>>
    %62 = arith.index_cast %11 : i32 to index
    %c4_42 = arith.constant 4 : index
    %63 = memref.load %arg2[%62, %c4_42] : memref<2x5xf32, #tpu.memory_space<smem>>
    %cst = arith.constant 2.000000e+00 : f32
    %64 = arith.mulf %cst, %55 : f32
    %65 = arith.mulf %64, %55 : f32
    %cst_43 = arith.constant 1.000000e+00 : f32
    %66 = arith.subf %cst_43, %65 : f32
    %cst_44 = arith.constant 2.000000e+00 : f32
    %67 = arith.mulf %cst_44, %57 : f32
    %68 = arith.mulf %67, %57 : f32
    %69 = arith.subf %66, %68 : f32
    %cst_45 = arith.constant 2.000000e+00 : f32
    %70 = arith.mulf %cst_45, %53 : f32
    %71 = arith.mulf %70, %55 : f32
    %cst_46 = arith.constant 2.000000e+00 : f32
    %72 = arith.mulf %cst_46, %51 : f32
    %73 = arith.mulf %72, %57 : f32
    %74 = arith.subf %71, %73 : f32
    %cst_47 = arith.constant 2.000000e+00 : f32
    %75 = arith.mulf %cst_47, %57 : f32
    %76 = arith.mulf %75, %53 : f32
    %cst_48 = arith.constant 2.000000e+00 : f32
    %77 = arith.mulf %cst_48, %51 : f32
    %78 = arith.mulf %77, %55 : f32
    %79 = arith.addf %76, %78 : f32
    %cst_49 = arith.constant 2.000000e+00 : f32
    %80 = arith.mulf %cst_49, %53 : f32
    %81 = arith.mulf %80, %55 : f32
    %cst_50 = arith.constant 2.000000e+00 : f32
    %82 = arith.mulf %cst_50, %51 : f32
    %83 = arith.mulf %82, %57 : f32
    %84 = arith.addf %81, %83 : f32
    %cst_51 = arith.constant 2.000000e+00 : f32
    %85 = arith.mulf %cst_51, %53 : f32
    %86 = arith.mulf %85, %53 : f32
    %cst_52 = arith.constant 1.000000e+00 : f32
    %87 = arith.subf %cst_52, %86 : f32
    %cst_53 = arith.constant 2.000000e+00 : f32
    %88 = arith.mulf %cst_53, %57 : f32
    %89 = arith.mulf %88, %57 : f32
    %90 = arith.subf %87, %89 : f32
    %cst_54 = arith.constant 2.000000e+00 : f32
    %91 = arith.mulf %cst_54, %55 : f32
    %92 = arith.mulf %91, %57 : f32
    %cst_55 = arith.constant 2.000000e+00 : f32
    %93 = arith.mulf %cst_55, %51 : f32
    %94 = arith.mulf %93, %53 : f32
    %95 = arith.subf %92, %94 : f32
    %cst_56 = arith.constant 2.000000e+00 : f32
    %96 = arith.mulf %cst_56, %57 : f32
    %97 = arith.mulf %96, %53 : f32
    %cst_57 = arith.constant 2.000000e+00 : f32
    %98 = arith.mulf %cst_57, %51 : f32
    %99 = arith.mulf %98, %55 : f32
    %100 = arith.subf %97, %99 : f32
    %cst_58 = arith.constant 2.000000e+00 : f32
    %101 = arith.mulf %cst_58, %55 : f32
    %102 = arith.mulf %101, %57 : f32
    %cst_59 = arith.constant 2.000000e+00 : f32
    %103 = arith.mulf %cst_59, %51 : f32
    %104 = arith.mulf %103, %53 : f32
    %105 = arith.addf %102, %104 : f32
    %cst_60 = arith.constant 2.000000e+00 : f32
    %106 = arith.mulf %cst_60, %53 : f32
    %107 = arith.mulf %106, %53 : f32
    %cst_61 = arith.constant 1.000000e+00 : f32
    %108 = arith.subf %cst_61, %107 : f32
    %cst_62 = arith.constant 2.000000e+00 : f32
    %109 = arith.mulf %cst_62, %55 : f32
    %110 = arith.mulf %109, %55 : f32
    %111 = arith.subf %108, %110 : f32
    %112 = vector.broadcast %69 : f32 to vector<2x128xf32>
    %113 = arith.mulf %112, %13 : vector<2x128xf32>
    %114 = vector.broadcast %74 : f32 to vector<2x128xf32>
    %115 = arith.mulf %114, %15 : vector<2x128xf32>
    %116 = arith.addf %113, %115 : vector<2x128xf32>
    %117 = vector.broadcast %79 : f32 to vector<2x128xf32>
    %118 = arith.mulf %117, %17 : vector<2x128xf32>
    %119 = arith.addf %116, %118 : vector<2x128xf32>
    %120 = vector.broadcast %45 : f32 to vector<2x128xf32>
    %121 = arith.addf %119, %120 : vector<2x128xf32>
    %122 = vector.broadcast %84 : f32 to vector<2x128xf32>
    %123 = arith.mulf %122, %13 : vector<2x128xf32>
    %124 = vector.broadcast %90 : f32 to vector<2x128xf32>
    %125 = arith.mulf %124, %15 : vector<2x128xf32>
    %126 = arith.addf %123, %125 : vector<2x128xf32>
    %127 = vector.broadcast %95 : f32 to vector<2x128xf32>
    %128 = arith.mulf %127, %17 : vector<2x128xf32>
    %129 = arith.addf %126, %128 : vector<2x128xf32>
    %130 = vector.broadcast %47 : f32 to vector<2x128xf32>
    %131 = arith.addf %129, %130 : vector<2x128xf32>
    %132 = vector.broadcast %100 : f32 to vector<2x128xf32>
    %133 = arith.mulf %132, %13 : vector<2x128xf32>
    %134 = vector.broadcast %105 : f32 to vector<2x128xf32>
    %135 = arith.mulf %134, %15 : vector<2x128xf32>
    %136 = arith.addf %133, %135 : vector<2x128xf32>
    %137 = vector.broadcast %111 : f32 to vector<2x128xf32>
    %138 = arith.mulf %137, %17 : vector<2x128xf32>
    %139 = arith.addf %136, %138 : vector<2x128xf32>
    %140 = vector.broadcast %49 : f32 to vector<2x128xf32>
    %141 = arith.addf %139, %140 : vector<2x128xf32>
    %cst_63 = arith.constant 1.000000e+00 : f32
    %142 = vector.broadcast %cst_63 : f32 to vector<2x128xf32>
    %143 = arith.select %9, %141, %142 : vector<2x128xi1>, vector<2x128xf32>
    %144 = tpu.reciprocal %143 : vector<2x128xf32> -> vector<2x128xf32>
    %145 = vector.broadcast %59 : f32 to vector<2x128xf32>
    %146 = arith.mulf %145, %121 : vector<2x128xf32>
    %147 = arith.mulf %146, %144 : vector<2x128xf32>
    %148 = vector.broadcast %61 : f32 to vector<2x128xf32>
    %149 = arith.addf %147, %148 : vector<2x128xf32>
    %150 = vector.broadcast %59 : f32 to vector<2x128xf32>
    %151 = arith.mulf %150, %131 : vector<2x128xf32>
    %152 = arith.mulf %151, %144 : vector<2x128xf32>
    %153 = vector.broadcast %63 : f32 to vector<2x128xf32>
    %154 = arith.addf %152, %153 : vector<2x128xf32>
    %155 = arith.subf %29, %149 : vector<2x128xf32>
    %156 = arith.subf %31, %154 : vector<2x128xf32>
    %157 = arith.mulf %155, %155 : vector<2x128xf32>
    %158 = arith.mulf %156, %156 : vector<2x128xf32>
    %159 = arith.addf %157, %158 : vector<2x128xf32>
    %160 = math.sqrt %159 : vector<2x128xf32>
    %161 = arith.mulf %25, %160 : vector<2x128xf32>
    %c2_i32_64 = arith.constant 2 : i32
    %162 = arith.muli %arg0, %c2_i32_64 : i32
    %c1_i32 = arith.constant 1 : i32
    %163 = arith.addi %162, %c1_i32 : i32
    %c1_65 = arith.constant 1 : index
    %c0_66 = arith.constant 0 : index
    %c0_67 = arith.constant 0 : index
    %c0_68 = arith.constant 0 : index
    %164 = vector.load %arg3[%c1_65, %c0_66, %c0_67, %c0_68] : memref<2x3x2x128xf32, #tpu.memory_space<vmem>>, vector<1x1x2x128xf32>
    %165 = vector.shape_cast %164 : vector<1x1x2x128xf32> to vector<2x128xf32>
    %c1_69 = arith.constant 1 : index
    %c1_70 = arith.constant 1 : index
    %c0_71 = arith.constant 0 : index
    %c0_72 = arith.constant 0 : index
    %166 = vector.load %arg3[%c1_69, %c1_70, %c0_71, %c0_72] : memref<2x3x2x128xf32, #tpu.memory_space<vmem>>, vector<1x1x2x128xf32>
    %167 = vector.shape_cast %166 : vector<1x1x2x128xf32> to vector<2x128xf32>
    %c1_73 = arith.constant 1 : index
    %c2_74 = arith.constant 2 : index
    %c0_75 = arith.constant 0 : index
    %c0_76 = arith.constant 0 : index
    %168 = vector.load %arg3[%c1_73, %c2_74, %c0_75, %c0_76] : memref<2x3x2x128xf32, #tpu.memory_space<vmem>>, vector<1x1x2x128xf32>
    %169 = vector.shape_cast %168 : vector<1x1x2x128xf32> to vector<2x128xf32>
    %c1_77 = arith.constant 1 : index
    %c0_78 = arith.constant 0 : index
    %c0_79 = arith.constant 0 : index
    %c0_80 = arith.constant 0 : index
    %170 = vector.load %arg4[%c1_77, %c0_78, %c0_79, %c0_80] : memref<2x3x2x128xf32, #tpu.memory_space<vmem>>, vector<1x1x2x128xf32>
    %171 = vector.shape_cast %170 : vector<1x1x2x128xf32> to vector<2x128xf32>
    %c1_81 = arith.constant 1 : index
    %c1_82 = arith.constant 1 : index
    %c0_83 = arith.constant 0 : index
    %c0_84 = arith.constant 0 : index
    %172 = vector.load %arg4[%c1_81, %c1_82, %c0_83, %c0_84] : memref<2x3x2x128xf32, #tpu.memory_space<vmem>>, vector<1x1x2x128xf32>
    %173 = vector.shape_cast %172 : vector<1x1x2x128xf32> to vector<2x128xf32>
    %c1_85 = arith.constant 1 : index
    %c2_86 = arith.constant 2 : index
    %c0_87 = arith.constant 0 : index
    %c0_88 = arith.constant 0 : index
    %174 = vector.load %arg4[%c1_85, %c2_86, %c0_87, %c0_88] : memref<2x3x2x128xf32, #tpu.memory_space<vmem>>, vector<1x1x2x128xf32>
    %175 = vector.shape_cast %174 : vector<1x1x2x128xf32> to vector<2x128xf32>
    %c1_89 = arith.constant 1 : index
    %c0_90 = arith.constant 0 : index
    %c0_91 = arith.constant 0 : index
    %176 = vector.load %arg6[%c1_89, %c0_90, %c0_91] : memref<2x2x128xf32, #tpu.memory_space<vmem>>, vector<1x2x128xf32>
    %177 = vector.shape_cast %176 : vector<1x2x128xf32> to vector<2x128xf32>
    %c1_92 = arith.constant 1 : index
    %c0_93 = arith.constant 0 : index
    %c0_94 = arith.constant 0 : index
    %178 = vector.load %arg5[%c1_92, %c0_93, %c0_94] : memref<2x2x128xf32, #tpu.memory_space<vmem>>, vector<1x2x128xf32>
    %179 = vector.shape_cast %178 : vector<1x2x128xf32> to vector<2x128xf32>
    %c1_95 = arith.constant 1 : index
    %c0_96 = arith.constant 0 : index
    %c0_97 = arith.constant 0 : index
    %c0_98 = arith.constant 0 : index
    %180 = vector.load %arg7[%c1_95, %c0_96, %c0_97, %c0_98] : memref<2x2x2x128xf32, #tpu.memory_space<vmem>>, vector<1x1x2x128xf32>
    %181 = vector.shape_cast %180 : vector<1x1x2x128xf32> to vector<2x128xf32>
    %c1_99 = arith.constant 1 : index
    %c1_100 = arith.constant 1 : index
    %c0_101 = arith.constant 0 : index
    %c0_102 = arith.constant 0 : index
    %182 = vector.load %arg7[%c1_99, %c1_100, %c0_101, %c0_102] : memref<2x2x2x128xf32, #tpu.memory_space<vmem>>, vector<1x1x2x128xf32>
    %183 = vector.shape_cast %182 : vector<1x1x2x128xf32> to vector<2x128xf32>
    %184 = arith.subf %165, %171 : vector<2x128xf32>
    %185 = arith.subf %167, %173 : vector<2x128xf32>
    %186 = arith.subf %169, %175 : vector<2x128xf32>
    %187 = arith.mulf %184, %184 : vector<2x128xf32>
    %188 = arith.mulf %185, %185 : vector<2x128xf32>
    %189 = arith.addf %187, %188 : vector<2x128xf32>
    %190 = arith.mulf %186, %186 : vector<2x128xf32>
    %191 = arith.addf %189, %190 : vector<2x128xf32>
    %192 = math.sqrt %191 : vector<2x128xf32>
    %193 = arith.mulf %177, %192 : vector<2x128xf32>
    %194 = arith.subf %177, %179 : vector<2x128xf32>
    %195 = arith.mulf %194, %194 : vector<2x128xf32>
    %196 = arith.index_cast %163 : i32 to index
    %c0_103 = arith.constant 0 : index
    %197 = memref.load %arg1[%196, %c0_103] : memref<2x7xf32, #tpu.memory_space<smem>>
    %198 = arith.index_cast %163 : i32 to index
    %c1_104 = arith.constant 1 : index
    %199 = memref.load %arg1[%198, %c1_104] : memref<2x7xf32, #tpu.memory_space<smem>>
    %200 = arith.index_cast %163 : i32 to index
    %c2_105 = arith.constant 2 : index
    %201 = memref.load %arg1[%200, %c2_105] : memref<2x7xf32, #tpu.memory_space<smem>>
    %202 = arith.index_cast %163 : i32 to index
    %c3_106 = arith.constant 3 : index
    %203 = memref.load %arg1[%202, %c3_106] : memref<2x7xf32, #tpu.memory_space<smem>>
    %204 = arith.index_cast %163 : i32 to index
    %c4_107 = arith.constant 4 : index
    %205 = memref.load %arg1[%204, %c4_107] : memref<2x7xf32, #tpu.memory_space<smem>>
    %206 = arith.index_cast %163 : i32 to index
    %c5_108 = arith.constant 5 : index
    %207 = memref.load %arg1[%206, %c5_108] : memref<2x7xf32, #tpu.memory_space<smem>>
    %208 = arith.index_cast %163 : i32 to index
    %c6_109 = arith.constant 6 : index
    %209 = memref.load %arg1[%208, %c6_109] : memref<2x7xf32, #tpu.memory_space<smem>>
    %210 = arith.index_cast %163 : i32 to index
    %c2_110 = arith.constant 2 : index
    %211 = memref.load %arg2[%210, %c2_110] : memref<2x5xf32, #tpu.memory_space<smem>>
    %212 = arith.index_cast %163 : i32 to index
    %c3_111 = arith.constant 3 : index
    %213 = memref.load %arg2[%212, %c3_111] : memref<2x5xf32, #tpu.memory_space<smem>>
    %214 = arith.index_cast %163 : i32 to index
    %c4_112 = arith.constant 4 : index
    %215 = memref.load %arg2[%214, %c4_112] : memref<2x5xf32, #tpu.memory_space<smem>>
    %cst_113 = arith.constant 2.000000e+00 : f32
    %216 = arith.mulf %cst_113, %207 : f32
    %217 = arith.mulf %216, %207 : f32
    %cst_114 = arith.constant 1.000000e+00 : f32
    %218 = arith.subf %cst_114, %217 : f32
    %cst_115 = arith.constant 2.000000e+00 : f32
    %219 = arith.mulf %cst_115, %209 : f32
    %220 = arith.mulf %219, %209 : f32
    %221 = arith.subf %218, %220 : f32
    %cst_116 = arith.constant 2.000000e+00 : f32
    %222 = arith.mulf %cst_116, %205 : f32
    %223 = arith.mulf %222, %207 : f32
    %cst_117 = arith.constant 2.000000e+00 : f32
    %224 = arith.mulf %cst_117, %203 : f32
    %225 = arith.mulf %224, %209 : f32
    %226 = arith.subf %223, %225 : f32
    %cst_118 = arith.constant 2.000000e+00 : f32
    %227 = arith.mulf %cst_118, %209 : f32
    %228 = arith.mulf %227, %205 : f32
    %cst_119 = arith.constant 2.000000e+00 : f32
    %229 = arith.mulf %cst_119, %203 : f32
    %230 = arith.mulf %229, %207 : f32
    %231 = arith.addf %228, %230 : f32
    %cst_120 = arith.constant 2.000000e+00 : f32
    %232 = arith.mulf %cst_120, %205 : f32
    %233 = arith.mulf %232, %207 : f32
    %cst_121 = arith.constant 2.000000e+00 : f32
    %234 = arith.mulf %cst_121, %203 : f32
    %235 = arith.mulf %234, %209 : f32
    %236 = arith.addf %233, %235 : f32
    %cst_122 = arith.constant 2.000000e+00 : f32
    %237 = arith.mulf %cst_122, %205 : f32
    %238 = arith.mulf %237, %205 : f32
    %cst_123 = arith.constant 1.000000e+00 : f32
    %239 = arith.subf %cst_123, %238 : f32
    %cst_124 = arith.constant 2.000000e+00 : f32
    %240 = arith.mulf %cst_124, %209 : f32
    %241 = arith.mulf %240, %209 : f32
    %242 = arith.subf %239, %241 : f32
    %cst_125 = arith.constant 2.000000e+00 : f32
    %243 = arith.mulf %cst_125, %207 : f32
    %244 = arith.mulf %243, %209 : f32
    %cst_126 = arith.constant 2.000000e+00 : f32
    %245 = arith.mulf %cst_126, %203 : f32
    %246 = arith.mulf %245, %205 : f32
    %247 = arith.subf %244, %246 : f32
    %cst_127 = arith.constant 2.000000e+00 : f32
    %248 = arith.mulf %cst_127, %209 : f32
    %249 = arith.mulf %248, %205 : f32
    %cst_128 = arith.constant 2.000000e+00 : f32
    %250 = arith.mulf %cst_128, %203 : f32
    %251 = arith.mulf %250, %207 : f32
    %252 = arith.subf %249, %251 : f32
    %cst_129 = arith.constant 2.000000e+00 : f32
    %253 = arith.mulf %cst_129, %207 : f32
    %254 = arith.mulf %253, %209 : f32
    %cst_130 = arith.constant 2.000000e+00 : f32
    %255 = arith.mulf %cst_130, %203 : f32
    %256 = arith.mulf %255, %205 : f32
    %257 = arith.addf %254, %256 : f32
    %cst_131 = arith.constant 2.000000e+00 : f32
    %258 = arith.mulf %cst_131, %205 : f32
    %259 = arith.mulf %258, %205 : f32
    %cst_132 = arith.constant 1.000000e+00 : f32
    %260 = arith.subf %cst_132, %259 : f32
    %cst_133 = arith.constant 2.000000e+00 : f32
    %261 = arith.mulf %cst_133, %207 : f32
    %262 = arith.mulf %261, %207 : f32
    %263 = arith.subf %260, %262 : f32
    %264 = vector.broadcast %221 : f32 to vector<2x128xf32>
    %265 = arith.mulf %264, %165 : vector<2x128xf32>
    %266 = vector.broadcast %226 : f32 to vector<2x128xf32>
    %267 = arith.mulf %266, %167 : vector<2x128xf32>
    %268 = arith.addf %265, %267 : vector<2x128xf32>
    %269 = vector.broadcast %231 : f32 to vector<2x128xf32>
    %270 = arith.mulf %269, %169 : vector<2x128xf32>
    %271 = arith.addf %268, %270 : vector<2x128xf32>
    %272 = vector.broadcast %197 : f32 to vector<2x128xf32>
    %273 = arith.addf %271, %272 : vector<2x128xf32>
    %274 = vector.broadcast %236 : f32 to vector<2x128xf32>
    %275 = arith.mulf %274, %165 : vector<2x128xf32>
    %276 = vector.broadcast %242 : f32 to vector<2x128xf32>
    %277 = arith.mulf %276, %167 : vector<2x128xf32>
    %278 = arith.addf %275, %277 : vector<2x128xf32>
    %279 = vector.broadcast %247 : f32 to vector<2x128xf32>
    %280 = arith.mulf %279, %169 : vector<2x128xf32>
    %281 = arith.addf %278, %280 : vector<2x128xf32>
    %282 = vector.broadcast %199 : f32 to vector<2x128xf32>
    %283 = arith.addf %281, %282 : vector<2x128xf32>
    %284 = vector.broadcast %252 : f32 to vector<2x128xf32>
    %285 = arith.mulf %284, %165 : vector<2x128xf32>
    %286 = vector.broadcast %257 : f32 to vector<2x128xf32>
    %287 = arith.mulf %286, %167 : vector<2x128xf32>
    %288 = arith.addf %285, %287 : vector<2x128xf32>
    %289 = vector.broadcast %263 : f32 to vector<2x128xf32>
    %290 = arith.mulf %289, %169 : vector<2x128xf32>
    %291 = arith.addf %288, %290 : vector<2x128xf32>
    %292 = vector.broadcast %201 : f32 to vector<2x128xf32>
    %293 = arith.addf %291, %292 : vector<2x128xf32>
    %cst_134 = arith.constant 1.000000e+00 : f32
    %294 = vector.broadcast %cst_134 : f32 to vector<2x128xf32>
    %295 = arith.select %9, %293, %294 : vector<2x128xi1>, vector<2x128xf32>
    %296 = tpu.reciprocal %295 : vector<2x128xf32> -> vector<2x128xf32>
    %297 = vector.broadcast %211 : f32 to vector<2x128xf32>
    %298 = arith.mulf %297, %273 : vector<2x128xf32>
    %299 = arith.mulf %298, %296 : vector<2x128xf32>
    %300 = vector.broadcast %213 : f32 to vector<2x128xf32>
    %301 = arith.addf %299, %300 : vector<2x128xf32>
    %302 = vector.broadcast %211 : f32 to vector<2x128xf32>
    %303 = arith.mulf %302, %283 : vector<2x128xf32>
    %304 = arith.mulf %303, %296 : vector<2x128xf32>
    %305 = vector.broadcast %215 : f32 to vector<2x128xf32>
    %306 = arith.addf %304, %305 : vector<2x128xf32>
    %307 = arith.subf %181, %301 : vector<2x128xf32>
    %308 = arith.subf %183, %306 : vector<2x128xf32>
    %309 = arith.mulf %307, %307 : vector<2x128xf32>
    %310 = arith.mulf %308, %308 : vector<2x128xf32>
    %311 = arith.addf %309, %310 : vector<2x128xf32>
    %312 = math.sqrt %311 : vector<2x128xf32>
    %313 = arith.mulf %177, %312 : vector<2x128xf32>
    %314 = arith.addf %41, %193 : vector<2x128xf32>
    %315 = arith.addf %161, %313 : vector<2x128xf32>
    %316 = arith.addf %43, %195 : vector<2x128xf32>
    %c0_135 = arith.constant 0 : index
    %c0_136 = arith.constant 0 : index
    %317 = vector.load %arg11[%c0_135, %c0_136] : memref<2x128xf32, #tpu.memory_space<vmem>>, vector<2x128xf32>
    %318 = arith.addf %317, %314 : vector<2x128xf32>
    %c0_137 = arith.constant 0 : index
    %c0_138 = arith.constant 0 : index
    %319 = vector.load %arg11[%c0_137, %c0_138] : memref<2x128xf32, #tpu.memory_space<vmem>>, vector<2x128xf32>
    tpu.vector_store %arg11[%c0_137, %c0_138], %318 {strides = array<i32>} : memref<2x128xf32, #tpu.memory_space<vmem>>, vector<2x128xf32>,
    %c0_139 = arith.constant 0 : index
    %c0_140 = arith.constant 0 : index
    %320 = vector.load %arg12[%c0_139, %c0_140] : memref<2x128xf32, #tpu.memory_space<vmem>>, vector<2x128xf32>
    %321 = arith.addf %320, %315 : vector<2x128xf32>
    %c0_141 = arith.constant 0 : index
    %c0_142 = arith.constant 0 : index
    %322 = vector.load %arg12[%c0_141, %c0_142] : memref<2x128xf32, #tpu.memory_space<vmem>>, vector<2x128xf32>
    tpu.vector_store %arg12[%c0_141, %c0_142], %321 {strides = array<i32>} : memref<2x128xf32, #tpu.memory_space<vmem>>, vector<2x128xf32>,
    %c0_143 = arith.constant 0 : index
    %c0_144 = arith.constant 0 : index
    %323 = vector.load %arg13[%c0_143, %c0_144] : memref<2x128xf32, #tpu.memory_space<vmem>>, vector<2x128xf32>
    %324 = arith.addf %323, %316 : vector<2x128xf32>
    %c0_145 = arith.constant 0 : index
    %c0_146 = arith.constant 0 : index
    %325 = vector.load %arg13[%c0_145, %c0_146] : memref<2x128xf32, #tpu.memory_space<vmem>>, vector<2x128xf32>
    tpu.vector_store %arg13[%c0_145, %c0_146], %324 {strides = array<i32>} : memref<2x128xf32, #tpu.memory_space<vmem>>, vector<2x128xf32>,
    %c0_i32_147 = arith.constant 0 : i32
    %326 = arith.cmpi eq, %arg0, %c0_i32_147 : i32
    %327 = arith.extui %326 : i1 to i32
    %c0_i32_148 = arith.constant 0 : i32
    %328 = arith.cmpi ne, %327, %c0_i32_148 : i32
    scf.if %328 {
      %c0_149 = arith.constant 0 : index
      %c0_150 = arith.constant 0 : index
      %329 = vector.load %arg11[%c0_149, %c0_150] : memref<2x128xf32, #tpu.memory_space<vmem>>, vector<2x128xf32>
      %330 = vector.shape_cast %329 : vector<2x128xf32> to vector<1x2x128xf32>
      %cst_151 = arith.constant dense<0.000000e+00> : vector<1xf32>
      %331 = vector.multi_reduction <add>, %330, %cst_151 [1, 2] : vector<1x2x128xf32> to vector<1xf32>
      %332 = vector.shape_cast %331 : vector<1xf32> to vector<1x1x1xf32>
      %333 = vector.extract %332[0, 0, 0] : f32 from vector<1x1x1xf32>
      %334 = vector.broadcast %333 : f32 to vector<1x1xf32>
      %cst_152 = arith.constant 5.000000e-01 : f32
      %335 = vector.broadcast %cst_152 : f32 to vector<1x1xf32>
      %336 = arith.mulf %334, %335 : vector<1x1xf32>
      %c0_153 = arith.constant 0 : index
      %c0_154 = arith.constant 0 : index
      %337 = vector.load %arg8[%c0_153, %c0_154] : memref<1x1xf32, #tpu.memory_space<vmem>>, vector<1x1xf32>
      tpu.vector_store %arg8[%c0_153, %c0_154], %336 {strides = array<i32>} : memref<1x1xf32, #tpu.memory_space<vmem>>, vector<1x1xf32>,
      %c0_155 = arith.constant 0 : index
      %c0_156 = arith.constant 0 : index
      %338 = vector.load %arg12[%c0_155, %c0_156] : memref<2x128xf32, #tpu.memory_space<vmem>>, vector<2x128xf32>
      %339 = vector.shape_cast %338 : vector<2x128xf32> to vector<1x2x128xf32>
      %cst_157 = arith.constant dense<0.000000e+00> : vector<1xf32>
      %340 = vector.multi_reduction <add>, %339, %cst_157 [1, 2] : vector<1x2x128xf32> to vector<1xf32>
      %341 = vector.shape_cast %340 : vector<1xf32> to vector<1x1x1xf32>
      %342 = vector.extract %341[0, 0, 0] : f32 from vector<1x1x1xf32>
      %343 = vector.broadcast %342 : f32 to vector<1x1xf32>
      %cst_158 = arith.constant 2.500000e-03 : f32
      %344 = vector.broadcast %cst_158 : f32 to vector<1x1xf32>
      %345 = arith.mulf %343, %344 : vector<1x1xf32>
      %c0_159 = arith.constant 0 : index
      %c0_160 = arith.constant 0 : index
      %346 = vector.load %arg9[%c0_159, %c0_160] : memref<1x1xf32, #tpu.memory_space<vmem>>, vector<1x1xf32>
      tpu.vector_store %arg9[%c0_159, %c0_160], %345 {strides = array<i32>} : memref<1x1xf32, #tpu.memory_space<vmem>>, vector<1x1xf32>,
      %c0_161 = arith.constant 0 : index
      %c0_162 = arith.constant 0 : index
      %347 = vector.load %arg13[%c0_161, %c0_162] : memref<2x128xf32, #tpu.memory_space<vmem>>, vector<2x128xf32>
      %348 = vector.shape_cast %347 : vector<2x128xf32> to vector<1x2x128xf32>
      %cst_163 = arith.constant dense<0.000000e+00> : vector<1xf32>
      %349 = vector.multi_reduction <add>, %348, %cst_163 [1, 2] : vector<1x2x128xf32> to vector<1xf32>
      %350 = vector.shape_cast %349 : vector<1xf32> to vector<1x1x1xf32>
      %351 = vector.extract %350[0, 0, 0] : f32 from vector<1x1x1xf32>
      %352 = vector.broadcast %351 : f32 to vector<1x1xf32>
      %353 = math.sqrt %352 : vector<1x1xf32>
      %cst_164 = arith.constant 5.000000e-01 : f32
      %354 = vector.broadcast %cst_164 : f32 to vector<1x1xf32>
      %355 = arith.mulf %353, %354 : vector<1x1xf32>
      %c0_165 = arith.constant 0 : index
      %c0_166 = arith.constant 0 : index
      %356 = vector.load %arg10[%c0_165, %c0_166] : memref<1x1xf32, #tpu.memory_space<vmem>>, vector<1x1xf32>
      tpu.vector_store %arg10[%c0_165, %c0_166], %355 {strides = array<i32>} : memref<1x1xf32, #tpu.memory_space<vmem>>, vector<1x1xf32>,
    } else {
    }
    return
  }
  func.func @transform_0(%arg0: i32) -> (i32, i32) {
    %c0_i32 = arith.constant 0 : i32
    %c0_i32_0 = arith.constant 0 : i32
    %c0_i32_1 = arith.constant 0 : i32
    return %c0_i32, %c0_i32_0 : i32, i32
  }
  func.func @transform_1(%arg0: i32) -> (i32, i32) {
    %c0_i32 = arith.constant 0 : i32
    %c0_i32_0 = arith.constant 0 : i32
    %c0_i32_1 = arith.constant 0 : i32
    return %c0_i32, %c0_i32_0 : i32, i32
  }
  func.func @transform_2(%arg0: i32) -> (i32, i32, i32, i32) {
    %c0_i32 = arith.constant 0 : i32
    %c0_i32_0 = arith.constant 0 : i32
    %c0_i32_1 = arith.constant 0 : i32
    %c0_i32_2 = arith.constant 0 : i32
    return %arg0, %c0_i32, %c0_i32_0, %c0_i32_1 : i32, i32, i32, i32
  }
  func.func @transform_3(%arg0: i32) -> (i32, i32, i32, i32) {
    %c0_i32 = arith.constant 0 : i32
    %c0_i32_0 = arith.constant 0 : i32
    %c0_i32_1 = arith.constant 0 : i32
    %c0_i32_2 = arith.constant 0 : i32
    return %arg0, %c0_i32, %c0_i32_0, %c0_i32_1 : i32, i32, i32, i32
  }
  func.func @transform_4(%arg0: i32) -> (i32, i32, i32) {
    %c0_i32 = arith.constant 0 : i32
    %c0_i32_0 = arith.constant 0 : i32
    %c0_i32_1 = arith.constant 0 : i32
    return %arg0, %c0_i32, %c0_i32_0 : i32, i32, i32
  }
  func.func @transform_5(%arg0: i32) -> (i32, i32, i32) {
    %c0_i32 = arith.constant 0 : i32
    %c0_i32_0 = arith.constant 0 : i32
    %c0_i32_1 = arith.constant 0 : i32
    return %arg0, %c0_i32, %c0_i32_0 : i32, i32, i32
  }
  func.func @transform_6(%arg0: i32) -> (i32, i32, i32, i32) {
    %c0_i32 = arith.constant 0 : i32
    %c0_i32_0 = arith.constant 0 : i32
    %c0_i32_1 = arith.constant 0 : i32
    %c0_i32_2 = arith.constant 0 : i32
    return %arg0, %c0_i32, %c0_i32_0, %c0_i32_1 : i32, i32, i32, i32
  }
  func.func @transform_7(%arg0: i32) -> (i32, i32) {
    %c0_i32 = arith.constant 0 : i32
    %c0_i32_0 = arith.constant 0 : i32
    %c0_i32_1 = arith.constant 0 : i32
    return %c0_i32, %c0_i32_0 : i32, i32
  }
  func.func @transform_8(%arg0: i32) -> (i32, i32) {
    %c0_i32 = arith.constant 0 : i32
    %c0_i32_0 = arith.constant 0 : i32
    %c0_i32_1 = arith.constant 0 : i32
    return %c0_i32, %c0_i32_0 : i32, i32
  }
  func.func @transform_9(%arg0: i32) -> (i32, i32) {
    %c0_i32 = arith.constant 0 : i32
    %c0_i32_0 = arith.constant 0 : i32
    %c0_i32_1 = arith.constant 0 : i32
    return %c0_i32, %c0_i32_0 : i32, i32
  }
}

</mosaic_0001>

<bundles_post_ra>
// kernel: tpu_custom_call.1
= control target key start
LH: loop header
LB: loop body
LE: loop exit
PB: predicated region body
PF: predicated region fallthrough
CT: control target
= control target key end

     0   :  { %15 = vsyncpa [#allocation8], 0  ;;  %s1214_s0 = inlined_call_operand.hbm [shape: f32[2,7], index: 0, kind: input, shape index: {}]   ;;  %s1215_s1 = inlined_call_operand.hbm [shape: f32[2,5], index: 1, kind: input, shape index: {}]   ;;  %s1216_s2 = inlined_call_operand.hbm [shape: f32[2,3,2,128], index: 2, kind: input, shape index: {}]   ;;  %s1217_s3 = inlined_call_operand.hbm [shape: f32[2,3,2,128], index: 3, kind: input, shape index: {}]   ;;  %s1218_s4 = inlined_call_operand.hbm [shape: f32[2,2,128], index: 4, kind: input, shape index: {}]   ;;  %s1219_s5 = inlined_call_operand.vmem [shape: f32[2,2,128], index: 5, kind: input, shape index: {}]   ;;  %s1220_s6 = inlined_call_operand.hbm [shape: f32[2,2,2,128], index: 6, kind: input, shape index: {}]   ;;  %s1221_s7 = inlined_call_operand.hbm [shape: f32[1,1], index: 7, kind: output, shape index: {0}]   ;;  %s1222_s8 = inlined_call_operand.hbm [shape: f32[1,1], index: 8, kind: output, shape index: {1}]   ;;  %s1223_s9 = inlined_call_operand.hbm [shape: f32[1,1], index: 9, kind: output, shape index: {2}]  }
   0x1   :  { %16 = vsyncpa [#allocation10], 0 }
   0x2   :  { %17 = vsyncpa [#allocation6], 0 }
   0x3   :  { %18 = vsyncpa [#allocation13], 0 }
   0x4   :  { %19 = vsyncpa [#allocation16], 0 }
   0x5   :  { %20 = vsyncpa [#allocation7], 0 }
   0x6   :  { %21 = vsyncpa [#allocation19], 0  ;;  %s57_s11 = sshll.u32 %s1217_s3, 4  ;;  %s823_s12 = smov [#allocation12]   ;;  %s58_s11 = int_to_ptr.hbm [resolvable:$true] %s57_s11 }
   0x7   :  { %s59_s13 = sshll.u32 %s823_s12, 4  ;;  %s27_s16 = sshll.u32 %s1214_s0, 4  ;;  %s60_s13 = int_to_ptr.vmem [resolvable:$true] %s59_s13  ;;  %s28_s16 = int_to_ptr.hbm [resolvable:$true] %s27_s16 }
   0x8   :  { %s824_s17 = smov 32   ;;  %s825_s18 = smov 2  }
   0x9   :  { %65 = dma.hbm_to_vmem [thread:$0]  %s58_s11, 192, %s60_s13, [#allocation13], %s824_s17, %s824_s17, %s825_s18  }
   0xa   :  { %s826_s19 = smov [#allocation5]   ;;  %s36_s3 = sshll.u32 %s1215_s1, 4  ;;  %s37_s3 = int_to_ptr.hbm [resolvable:$true] %s36_s3 }
   0xb   :  { %30 = dma.hbm_to_smem %s28_s16, 32, %s826_s19, [#allocation8]  }
   0xc   :  { %s44_s24 = sshll.u32 %s1216_s2, 4  ;;  %s827_s25 = smov [#allocation9]   ;;  %s45_s24 = int_to_ptr.hbm [resolvable:$true] %s44_s24 }
   0xd   :  { %39 = dma.hbm_to_smem %s37_s3, 32, %s827_s25, [#allocation10]  }
   0xe   :  { %s828_s0 = smov [#allocation11]   ;;  %s70_s29 = sshll.u32 %s1218_s4, 4  ;;  %s71_s29 = int_to_ptr.hbm [resolvable:$true] %s70_s29 }
   0xf   :  { %s46_s26 = sshll.u32 %s828_s0, 4  ;;  %s85_s10 = sshll.u32 %s1220_s6, 4  ;;  %s47_s26 = int_to_ptr.vmem [resolvable:$true] %s46_s26  ;;  %s86_s10 = int_to_ptr.hbm [resolvable:$true] %s85_s10 }
  0x10   :  { %52 = dma.hbm_to_vmem [thread:$0]  %s45_s24, 192, %s47_s26, [#allocation6], %s824_s17, %s824_s17, %s825_s18  }
  0x11   :  { %s829_s2 = smov [#allocation14]   ;;  %s830_s12 = smov [#allocation15]  }
  0x12   :  { %s72_s11 = sshll.u32 %s829_s2, 4  ;;  %s87_s4 = sshll.u32 %s830_s12, 4  ;;  %s73_s11 = int_to_ptr.vmem [resolvable:$true] %s72_s11  ;;  %s88_s4 = int_to_ptr.vmem [resolvable:$true] %s87_s4 }
  0x13   :  { %78 = dma.hbm_to_vmem [thread:$0]  %s71_s29, 64, %s73_s11, [#allocation13], %s824_s17, %s824_s17, %s825_s18  }
  0x14   :  { %93 = dma.hbm_to_vmem [thread:$0]  %s86_s10, 128, %s88_s4, [#allocation16], %s824_s17, %s824_s17, %s825_s18  }
  0x15   :  { %809 = dma.done.wait [#allocation8], 32  }
  0x16   :  { %810 = vsyncadd [#allocation8], 4294967264 }
  0x17   :  { %811 = dma.done.wait [#allocation10], 32  }
  0x18   :  { %812 = vsyncadd [#allocation10], 4294967264 }
  0x19   :  { %813 = dma.done.wait [#allocation6], 192  }
  0x1a   :  { %814 = vsyncadd [#allocation6], 4294967104 }
  0x1b   :  { %815 = dma.done.wait [#allocation13], 256  }
  0x1c   :  { %816 = vsyncadd [#allocation13], 4294967040 }
  0x1d   :  { %817 = dma.done.wait [#allocation16], 128  }
  0x1e   :  { %818 = vsyncadd [#allocation16], 4294967168 }
  0x1f   :  { %118 = sfence }
  0x20   :  { %v915_v0 = vld [vmem:[#allocation11] sm:$0x3]  ;;  %v831_v1 = vmov 0.0   ;;  %v917_v2 = vld [vmem:[#allocation11 + $0x2] sm:$0x3]  ;;  %s567_s6 = sld [smem:[#allocation5 + $0x3]]  ;;  %v126_v27 = vlaneseq }
  0x21   :  { %123 = vst [vmem:[#allocation2] sm:$0x3] %v831_v1  ;;  %v139_v3 = vld [vmem:[#allocation12] sm:$0x3]  ;;  %v919_v4 = vld [vmem:[#allocation11 + $0x4] sm:$0x3] }
  0x22   :  { %v141_v5 = vld [vmem:[#allocation12 + $0x2] sm:$0x3]  ;;  %v143_v6 = vld [vmem:[#allocation12 + $0x4] sm:$0x3]  ;;  %v149_v7 = vsub.f32 %v915_v0, %v139_v3  ;;  %v924_v11 = vld [vmem:[#allocation11 + $0x6] sm:$0x3] }
  0x23   :  { %v150_v8 = vsub.f32 %v917_v2, %v141_v5  ;;  %v151_v9 = vsub.f32 %v919_v4, %v143_v6  ;;  %s926_s13 = sld [smem:[#allocation5 + $0x4]]  ;;  %v928_v14 = vld [vmem:[#allocation11 + $0x8] sm:$0x3]  ;;  %124 = vst [vmem:[#allocation3] sm:$0x3] %v831_v1  ;;  %v127_v30 = vshrl.u32 %v126_v27, 7 }
  0x24   :  { %v152_v10 = vmul.f32 %v149_v7, %v149_v7  ;;  %s930_s14 = sld [smem:[#allocation5 + $0x5]]  ;;  %v293_v15 = vld [vmem:[#allocation12 + $0x6] sm:$0x3]  ;;  %v295_v16 = vld [vmem:[#allocation12 + $0x8] sm:$0x3]  ;;  %v129_v33 = vand.u32 127, %v126_v27 }
  0x25   :  { %v153_v12 = vmul.f32 %v150_v8, %v150_v8  ;;  %v155_v13 = vmul.f32 %v151_v9, %v151_v9  ;;  %s932_s15 = sld [smem:[#allocation5 + $0x6]]  ;;  %v934_v18 = vld [vmem:[#allocation11 + $0xa] sm:$0x3]  ;;  %v297_v19 = vld [vmem:[#allocation12 + $0xa] sm:$0x3]  ;;  %v306_v20 = vsub.f32 %v924_v11, %v293_v15  ;;  %v307_v21 = vsub.f32 %v928_v14, %v295_v16 }
  0x26   :  { %v308_v22 = vsub.f32 %v934_v18, %v297_v19  ;;  %125 = vst [vmem:[#allocation4] sm:$0x3] %v831_v1  ;;  %s941_s16 = smul.f32 2.0, %s567_s6  ;;  %s945_s18 = sld [smem:[#allocation5 + $0x2]]  ;;  %v130_v34 = vmul.u32 128, %v127_v30  ;;  %vm458_vm5 = vcmask 1041408  }
  0x27   :  { %v154_v17 = vadd.f32 %v153_v12, %v152_v10  ;;  %v309_v24 = vmul.f32 %v306_v20, %v306_v20  ;;  %v310_v25 = vmul.f32 %v307_v21, %v307_v21  ;;  %s949_s21 = sld [smem:[#allocation5 + $0x82]]  ;;  %v985_v35 = vld [vmem:[%s1219_s5] sm:$0x3]  ;;  %v1002_v37 = vld [vmem:[%s1219_s5 + $0x2] sm:$0x3] }
  0x28   :  { %v312_v26 = vmul.f32 %v308_v22, %v308_v22  ;;  %s958_s22 = sld [smem:[#allocation5 + $0x85]]  ;;  %v145_v38 = vld [vmem:[#allocation14] sm:$0x3]  ;;  %v301_v39 = vld [vmem:[#allocation14 + $0x2] sm:$0x3]  ;;  %v1022_v46 = vadd.s32 %v130_v34, %v129_v33 }
  0x29   :  { %v939_v23 = vadd.f32 %v155_v13, %v154_v17  ;;  %s195_s17 = smul.f32 2.0, %s926_s13  ;;  %v311_v28 = vadd.f32 %v310_v25, %v309_v24  ;;  %s963_s24 = sld [smem:[#allocation5 + $0x86]]  ;;  %v170_v40 = vsub.f32 %v985_v35, %v145_v38  ;;  %v327_v41 = vsub.f32 %v1002_v37, %v301_v39 }
  0x2a   :  { %s189_s19 = smul.f32 2.0, %s930_s14  ;;  %s974_s27 = sld [smem:[#allocation5 + $0x83]]  ;;  %vm132_vm4 = vcmp.lt.s32.totalorder %v1022_v46, 200 }
  0x2b   :  { %603 = vrsqrt.f32 %v939_v23  ;;  %s192_s20 = smul.f32 2.0, %s932_s15  ;;  %v956_v29 = vadd.f32 %v312_v26, %v311_v28  ;;  %s980_s29 = sld [smem:[#allocation5 + $0x84]]  ;;  %v171_v45 = vmul.f32 %v170_v40, %v170_v40  ;;  %v328_v48 = vmul.f32 %v327_v41, %v327_v41 }
  0x2c   :  { %s954_s3 = smul.f32 %s930_s14, %s189_s19  ;;  %v241_v51 = vstv %s945_s18  ;;  %vm164_vm0 = vcmp.eq.f32.partialorder %v939_v23, inf  ;;  %vm166_vm1 = vcmp.eq.f32.partialorder %v939_v23, 0.0  ;;  %v167_v54 = vand.u32 2147483648, %v939_v23  ;;  %s1089_s6 = sld [smem:[#allocation5 + $0x1]] }
  0x2d   :  { %s961_s23 = smul.f32 %s932_s15, %s192_s20  ;;  %605 = vrsqrt.f32 %v956_v29  ;;  %v444_v58 = vadd.f32 %v328_v48, %v171_v45  ;;  %v451_v59 = vld [vmem:[#allocation4] sm:$0x3]  ;;  %vm321_vm2 = vcmp.eq.f32.partialorder %v956_v29, inf  ;;  %v324_v15 = vand.u32 2147483648, %v956_v29 }
  0x2e   :  { %s191_s25 = ssub.f32 1.0, %s954_s3  ;;  %s967_s0 = smul.f32 %s930_s14, %s195_s17  ;;  %vm323_vm3 = vcmp.eq.f32.partialorder %v956_v29, 0.0 }
  0x2f   :  { %s972_s26 = smul.f32 %s932_s15, %s941_s16  ;;  %v452_v10 = vadd.f32 %v451_v59, %v444_v58 }
  0x30   :  { %s978_s28 = smul.f32 %s926_s13, %s192_s20  ;;  %s988_s10 = ssub.f32 %s191_s25, %s961_s23 }
  0x31   :  { %v604_v31 = vpop.eup %603  ;;  %s992_s2 = smul.f32 %s930_s14, %s941_s16  ;;  %s199_s11 = ssub.f32 %s967_s0, %s972_s26  ;;  %453 = vst [vmem:[#allocation4] sm:$0x3] %v452_v10 }
  0x32   :  { %v158_v32 = vmul.f32 %v604_v31, %v939_v23  ;;  %s997_s12 = smul.f32 %s926_s13, %s195_s17  ;;  %s203_s20 = sadd.f32 %s972_s26, %s967_s0  ;;  %v213_v49 = vstv %s988_s10  ;;  %v231_v45 = vstv %s1089_s6 }
  0x33   :  { %s1009_s25 = smul.f32 %s932_s15, %s189_s19  ;;  %v606_v42 = vpop.eup %605  ;;  %s210_s1 = ssub.f32 %s978_s28, %s992_s2  ;;  %v215_v55 = vstv %s199_s11  ;;  %v214_v61 = vmul.f32 %v213_v49, %v915_v0 }
  0x34   :  { %v159_v36 = vmul.f32 %v604_v31, %v158_v32  ;;  %s205_s5 = ssub.f32 1.0, %s997_s12  ;;  %s1016_s17 = smul.f32 %s926_s13, %s941_s16  ;;  %v315_v44 = vmul.f32 %v606_v42, %v956_v29  ;;  %v223_v62 = vstv %s203_s20  ;;  %v216_v8 = vmul.f32 %v215_v55, %v917_v2 }
  0x35   :  { %s346_s14 = smul.f32 2.0, %s958_s22  ;;  %s202_s15 = sadd.f32 %s992_s2, %s978_s28  ;;  %v233_v50 = vstv %s210_s1  ;;  %v224_v19 = vmul.f32 %v223_v62, %v915_v0 }
  0x36   :  { %v160_v43 = vmul.f32 0.5, %v159_v36  ;;  %s349_s19 = smul.f32 2.0, %s963_s24  ;;  %s1028_s13 = ssub.f32 %s205_s5, %s961_s23  ;;  %v316_v52 = vmul.f32 %v606_v42, %v315_v44  ;;  %v234_v56 = vmul.f32 %v233_v50, %v915_v0  ;;  %v217_v0 = vadd.f32 %v216_v8, %v214_v61 }
  0x37   :  { %s1035_s16 = smul.f32 %s958_s22, %s346_s14  ;;  %s211_s23 = sadd.f32 %s1016_s17, %s1009_s25  ;;  %v218_v17 = vstv %s202_s15 }
  0x38   :  { %v161_v47 = vsub.f32 1.5, %v160_v43  ;;  %s1045_s18 = smul.f32 %s963_s24, %s349_s19  ;;  %s212_s30 = ssub.f32 %s205_s5, %s954_s3  ;;  %v317_v57 = vmul.f32 0.5, %v316_v52  ;;  %v225_v1 = vstv %s1028_s13  ;;  %v219_v24 = vmul.f32 %v218_v17, %v919_v4  ;;  %v487_v36 = vld [vmem:[#allocation4] sm:$0x3] }
  0x39   :  { %s352_s10 = smul.f32 2.0, %s980_s29  ;;  %s209_s12 = ssub.f32 %s1009_s25, %s1016_s17  ;;  %v235_v63 = vstv %s211_s23  ;;  %v226_v20 = vmul.f32 %v225_v1, %v917_v2  ;;  %v488_v40 = vsel %vm458_vm5, %v487_v36, 0.0  ;;  %v398_v52 = vstv %s949_s21 }
  0x3a   :  { %v162_v53 = vmul.f32 %v604_v31, %v161_v47  ;;  %s1061_s3 = smul.f32 2.0, %s974_s27  ;;  %v236_v3 = vmul.f32 %v235_v63, %v917_v2  ;;  %v238_v5 = vstv %s212_s30  ;;  %v318_v6 = vsub.f32 1.5, %v317_v57  ;;  %s348_s11 = ssub.f32 1.0, %s1035_s16  ;;  %489 = vadd.xlane.f32.xlu1 %v488_v40 }
  0x3b   :  { %s1069_s4 = smul.f32 %s958_s22, %s352_s10  ;;  %v239_v9 = vmul.f32 %v238_v5, %v919_v4  ;;  %s1080_s26 = sld [smem:[#allocation5]]  ;;  %v228_v21 = vstv %s209_s12  ;;  %v227_v27 = vadd.f32 %v226_v20, %v224_v19  ;;  %v220_v33 = vadd.f32 %v219_v24, %v217_v0 }
  0x3c   :  { %v163_v60 = vmul.f32 %v162_v53, %v939_v23  ;;  %s1078_s0 = smul.f32 %s963_s24, %s1061_s3  ;;  %v237_v12 = vadd.f32 %v236_v3, %v234_v56  ;;  %v319_v13 = vmul.f32 %v606_v42, %v318_v6  ;;  %s1102_s25 = sld [smem:[#allocation9 + $0x2]]  ;;  %v229_v28 = vmul.f32 %v228_v21, %v919_v4  ;;  %v445_v4 = vld [vmem:[#allocation2] sm:$0x3] }
  0x3d   :  { %s1087_s27 = smul.f32 %s980_s29, %s349_s19  ;;  %s1107_s28 = ssub.f32 %s348_s11, %s1045_s18 }
  0x3e   :  { %v165_v7 = vsel %vm164_vm0, %v939_v23, %v163_v60  ;;  %s1100_s20 = smul.f32 %s958_s22, %s1061_s3  ;;  %v240_v22 = vadd.f32 %v239_v9, %v237_v12  ;;  %v320_v23 = vmul.f32 %v319_v13, %v956_v29  ;;  %s356_s5 = ssub.f32 %s1069_s4, %s1078_s0  ;;  %v230_v38 = vadd.f32 %v229_v28, %v227_v27  ;;  %v146_v28 = vld [vmem:[#allocation15] sm:$0x3] }
  0x3f   :  { %v168_v16 = vsel %vm166_vm1, %v167_v54, %v165_v7  ;;  %s1112_s2 = smul.f32 %s980_s29, %s352_s10  ;;  %v370_v42 = vstv %s1107_s28  ;;  %s1169_s23 = sld [smem:[#allocation9 + $0x3]] }
  0x40   :  { %s1120_s17 = smul.f32 %s963_s24, %s346_s14  ;;  %v169_v2 = vmul.f32 %v168_v16, %v985_v35  ;;  %v242_v25 = vadd.f32 %v241_v51, %v240_v22  ;;  %v322_v26 = vsel %vm321_vm2, %v956_v29, %v320_v23  ;;  %s367_s22 = ssub.f32 %s1087_s27, %s1100_s20  ;;  %v372_v47 = vstv %s356_s5 }
  0x41   :  { %s362_s1 = ssub.f32 1.0, %s1112_s2  ;;  %s1130_s15 = smul.f32 %s980_s29, %s1061_s3  ;;  %v325_v30 = vsel %vm323_vm3, %v324_v15, %v322_v26  ;;  %v221_v41 = vstv %s1080_s26  ;;  %v371_v56 = vmul.f32 %v370_v42, %v924_v11  ;;  %v232_v59 = vadd.f32 %v231_v45, %v230_v38 }
  0x42   :  { %v1137_v31 = vsel %vm132_vm4, %v242_v25, 1.0  ;;  %v326_v32 = vmul.f32 %v1002_v37, %v325_v30  ;;  %s360_s24 = sadd.f32 %s1078_s0, %s1069_s4  ;;  %v390_v29 = vstv %s367_s22  ;;  %v222_v53 = vadd.f32 %v221_v41, %v220_v33  ;;  %v148_v30 = vld [vmem:[#allocation15 + $0x2] sm:$0x3]  ;;  %s832_s4 = smov [#allocation17]  }
  0x43   :  { %607 = vrcp.f32 %v1137_v31  ;;  %s1144_s29 = ssub.f32 %s362_s1, %s1045_s18  ;;  %v391_v39 = vmul.f32 %v390_v29, %v924_v11  ;;  %v258_v54 = vstv %s1102_s25  ;;  %v373_v60 = vmul.f32 %v372_v47, %v928_v14  ;;  %s518_s0 = sshll.u32 %s832_s4, 4  ;;  %s519_s0 = int_to_ptr.vmem [resolvable:$true] %s518_s0 }
  0x44   :  { %s368_s14 = sadd.f32 %s1130_s15, %s1120_s17  ;;  %v442_v34 = vadd.f32 %v326_v32, %v169_v2  ;;  %v380_v48 = vstv %s360_s24  ;;  %vm249_vm6 = vweird.f32 %v1137_v31  ;;  %v253_v3 = vand.u32 2147483647, %v1137_v31  ;;  %s520_s6 = sshll.u32 %s1221_s7, 4  ;;  %s521_s6 = int_to_ptr.hbm [resolvable:$true] %s520_s6 }
  0x45   :  { %s369_s19 = ssub.f32 %s362_s1, %s1035_s16  ;;  %v382_v57 = vstv %s1144_s29  ;;  %v381_v62 = vmul.f32 %v380_v48, %v924_v11  ;;  %v255_v5 = vand.u32 2147483648, %v1137_v31  ;;  %v259_v9 = vmul.f32 %v258_v54, %v222_v53  ;;  %s531_s5 = sshll.u32 %s1222_s8, 4  ;;  %s532_s5 = int_to_ptr.hbm [resolvable:$true] %s531_s5 }
  0x46   :  { %s359_s13 = sadd.f32 %s1100_s20, %s1087_s27  ;;  %v392_v43 = vstv %s368_s14  ;;  %v446_v44 = vadd.f32 %v445_v4, %v442_v34  ;;  %v383_v6 = vmul.f32 %v382_v57, %v928_v14  ;;  %v374_v10 = vadd.f32 %v373_v60, %v371_v56  ;;  %v305_v60 = vld [vmem:[#allocation15 + $0x6] sm:$0x3]  ;;  %s833_s20 = smov [#allocation18]  }
  0x47   :  { %v393_v49 = vmul.f32 %v392_v43, %v928_v14  ;;  %v395_v50 = vstv %s369_s19  ;;  %s366_s16 = ssub.f32 %s1120_s17, %s1130_s15  ;;  %v263_v15 = vmul.f32 %v258_v54, %v232_v59  ;;  %vm254_vm9 = vcmp.eq.f32.partialorder %v253_v3, 8.507059e+37  ;;  %v303_v59 = vld [vmem:[#allocation15 + $0x4] sm:$0x3]  ;;  %s529_s25 = sshll.u32 %s833_s20, 4  ;;  %s530_s25 = int_to_ptr.vmem [resolvable:$true] %s529_s25 }
  0x48   :  { %v396_v51 = vmul.f32 %v395_v50, %v934_v18  ;;  %447 = vst [vmem:[#allocation2] sm:$0x3] %v446_v44  ;;  %v375_v61 = vstv %s359_s13  ;;  %s1172_s21 = sld [smem:[#allocation9 + $0x4]]  ;;  %v256_v19 = vor.u32 1.1754944e-38, %v255_v5  ;;  %v384_v20 = vadd.f32 %v383_v6, %v381_v62  ;;  %s834_s7 = smov [#allocation20]  }
  0x49   :  { %v608_v55 = vpop.eup %607  ;;  %v394_v58 = vadd.f32 %v393_v49, %v391_v39  ;;  %v385_v7 = vstv %s366_s16  ;;  %s1178_s18 = sld [smem:[#allocation5 + $0x80]]  ;;  %v376_v12 = vmul.f32 %v375_v61, %v934_v18  ;;  %v261_v0 = vstv %s1169_s23  ;;  %s540_s8 = sshll.u32 %s834_s7, 4  ;;  %s541_s8 = int_to_ptr.vmem [resolvable:$true] %s540_s8 }
  0x4a   :  { %v245_v63 = vmul.f32 %v608_v55, %v1137_v31  ;;  %vm250_vm7 = vweird.f32 %v608_v55  ;;  %s1180_s30 = sld [smem:[#allocation5 + $0x81]]  ;;  %v386_v16 = vmul.f32 %v385_v7, %v934_v18  ;;  %vm471_vm2 = vcmask 0   ;;  %s542_s24 = sshll.u32 %s1223_s9, 4  ;;  %s543_s24 = int_to_ptr.hbm [resolvable:$true] %s542_s24 }
  0x4b   :  { %v397_v1 = vadd.f32 %v396_v51, %v394_v58  ;;  %vm251_vm8 = vmor %vm249_vm6, %vm250_vm7  ;;  %s1189_s10 = sld [smem:[#allocation9 + $0x82]]  ;;  %v377_v18 = vadd.f32 %v376_v12, %v374_v10 }
  0x4c   :  { %v246_v8 = vsub.f32 1.0, %v245_v63  ;;  %v387_v24 = vadd.f32 %v386_v16, %v384_v20  ;;  %s1195_s12 = sld [smem:[#allocation9 + $0x83]] }
  0x4d   :  { %v399_v11 = vadd.f32 %v398_v52, %v397_v1  ;;  %s584_s3 = sld [smem:[#allocation9 + $0x84]] }
  0x4e   :  { %v247_v13 = vmul.f32 %v608_v55, %v246_v8  ;;  %v265_v2 = vstv %s1172_s21 }
  0x4f   :  { %v400_v14 = vsel %vm132_vm4, %v399_v11, 1.0  ;;  %v457_v17 = vld [vmem:[#allocation2] sm:$0x3]  ;;  %v378_v27 = vstv %s1178_s18 }
  0x50   :  { %609 = vrcp.f32 %v400_v14  ;;  %v459_v21 = vsel %vm458_vm5, %v457_v17, 0.0  ;;  %v248_v22 = vadd.f32 %v608_v55, %v247_v13  ;;  %v388_v31 = vstv %s1180_s30 }
  0x51   :  { %460 = vadd.xlane.f32.xlu0 %v459_v21  ;;  %v379_v33 = vadd.f32 %v378_v27, %v377_v18  ;;  %v389_v39 = vadd.f32 %v388_v31, %v387_v24  ;;  %v412_v40 = vand.u32 2147483648, %v400_v14  ;;  %vm406_vm10 = vweird.f32 %v400_v14 }
  0x52   :  { %v252_v23 = vsel %vm251_vm8, %v608_v55, %v248_v22  ;;  %v410_v42 = vand.u32 2147483647, %v400_v14  ;;  %v415_v45 = vstv %s1189_s10  ;;  %v418_v55 = vstv %s1195_s12 }
  0x53   :  { %v257_v46 = vsel %vm254_vm9, %v256_v19, %v252_v23  ;;  %v413_v49 = vor.u32 1.1754944e-38, %v412_v40  ;;  %v416_v51 = vmul.f32 %v415_v45, %v379_v33  ;;  %v420_v52 = vmul.f32 %v415_v45, %v389_v39 }
  0x54   :  { %v260_v25 = vmul.f32 %v259_v9, %v257_v46  ;;  %v264_v26 = vmul.f32 %v263_v15, %v257_v46  ;;  %vm411_vm13 = vcmp.eq.f32.partialorder %v410_v42, 8.507059e+37  ;;  %v422_v56 = vstv %s584_s3 }
  0x56   :  { %v610_v32 = vpop.eup %609  ;;  %v262_v29 = vadd.f32 %v261_v0, %v260_v25  ;;  %v266_v4 = vadd.f32 %v265_v2, %v264_v26  ;;  %v448_v26 = vld [vmem:[#allocation3] sm:$0x3] }
  0x57   :  { %v402_v34 = vmul.f32 %v610_v32, %v400_v14  ;;  %vm407_vm11 = vweird.f32 %v610_v32 }
  0x58   :  { %v267_v36 = vsub.f32 %v146_v28, %v262_v29  ;;  %v268_v38 = vsub.f32 %v148_v30, %v266_v4  ;;  %vm408_vm12 = vmor %vm406_vm10, %vm407_vm11 }
  0x59   :  { %v403_v41 = vsub.f32 1.0, %v402_v34 }
  0x5a   :  { %v269_v43 = vmul.f32 %v267_v36, %v267_v36  ;;  %v270_v44 = vmul.f32 %v268_v38, %v268_v38 }
  0x5b   :  { %v404_v47 = vmul.f32 %v610_v32, %v403_v41 }
  0x5c   :  { %v271_v48 = vadd.f32 %v270_v44, %v269_v43 }
  0x5d   :  { %v405_v50 = vadd.f32 %v610_v32, %v404_v47 }
  0x5e   :  { %611 = vrsqrt.f32 %v271_v48  ;;  %vm279_vm14 = vcmp.eq.f32.partialorder %v271_v48, inf  ;;  %v282_v19 = vand.u32 2147483648, %v271_v48  ;;  %vm281_vm15 = vcmp.eq.f32.partialorder %v271_v48, 0.0 }
  0x5f   :  { %v409_v53 = vsel %vm408_vm12, %v610_v32, %v405_v50 }
  0x60   :  { %v414_v54 = vsel %vm411_vm13, %v413_v49, %v409_v53 }
  0x61   :  { %v417_v57 = vmul.f32 %v416_v51, %v414_v54  ;;  %v421_v58 = vmul.f32 %v420_v52, %v414_v54 }
  0x63   :  { %v419_v61 = vadd.f32 %v418_v55, %v417_v57  ;;  %v423_v62 = vadd.f32 %v422_v56, %v421_v58 }
  0x64   :  { %v612_v63 = vpop.eup %611 }
  0x65   :  { %v273_v1 = vmul.f32 %v612_v63, %v271_v48  ;;  %v424_v3 = vsub.f32 %v303_v59, %v419_v61  ;;  %v425_v5 = vsub.f32 %v305_v60, %v423_v62 }
  0x67   :  { %v274_v6 = vmul.f32 %v612_v63, %v273_v1  ;;  %v426_v7 = vmul.f32 %v424_v3, %v424_v3  ;;  %v427_v8 = vmul.f32 %v425_v5, %v425_v5 }
  0x69   :  { %v275_v11 = vmul.f32 0.5, %v274_v6  ;;  %v428_v9 = vadd.f32 %v427_v8, %v426_v7 }
  0x6b   :  { %613 = vrsqrt.f32 %v428_v9  ;;  %v276_v10 = vsub.f32 1.5, %v275_v11  ;;  %vm436_vm0 = vcmp.eq.f32.partialorder %v428_v9, inf  ;;  %v439_v18 = vand.u32 2147483648, %v428_v9 }
  0x6c   :  { %vm438_vm1 = vcmp.eq.f32.partialorder %v428_v9, 0.0 }
  0x6d   :  { %v277_v12 = vmul.f32 %v612_v63, %v276_v10 }
  0x6f   :  { %v278_v16 = vmul.f32 %v277_v12, %v271_v48 }
  0x71   :  { %v614_v13 = vpop.eup %613  ;;  %v280_v20 = vsel %vm279_vm14, %v271_v48, %v278_v16 }
  0x72   :  { %v430_v15 = vmul.f32 %v614_v13, %v428_v9  ;;  %v283_v23 = vsel %vm281_vm15, %v282_v19, %v280_v20 }
  0x73   :  { %v284_v0 = vmul.f32 %v283_v23, %v985_v35 }
  0x74   :  { %v431_v14 = vmul.f32 %v614_v13, %v430_v15 }
  0x76   :  { %v432_v17 = vmul.f32 0.5, %v431_v14 }
  0x78   :  { %v433_v21 = vsub.f32 1.5, %v432_v17 }
  0x7a   :  { %v434_v22 = vmul.f32 %v614_v13, %v433_v21 }
  0x7c   :  { %v435_v46 = vmul.f32 %v434_v22, %v428_v9 }
  0x7e   :  { %v437_v2 = vsel %vm436_vm0, %v428_v9, %v435_v46 }
  0x7f   :  { %v440_v24 = vsel %vm438_vm1, %v439_v18, %v437_v2 }
  0x80   :  { %v441_v25 = vmul.f32 %v1002_v37, %v440_v24 }
  0x82   :  { %v443_v27 = vadd.f32 %v441_v25, %v284_v0 }
  0x84   :  { %v449_v28 = vadd.f32 %v448_v26, %v443_v27 }
  0x86   :  { %450 = vst [vmem:[#allocation3] sm:$0x3] %v449_v28 }
  0x8d   :  { %v473_v30 = vld [vmem:[#allocation3] sm:$0x3] }
  0x8e   :  { %v474_v31 = vsel %vm458_vm5, %v473_v30, 0.0 }
  0x8f   :  { %475 = vadd.xlane.f32.xlu0 %v474_v31 }
  0xad   :  { %v490_v35 = vpop.xlane.xlu1 %489 }
  0xae   :  { %v491_v39 = vrot.slane %v490_v35, 4 }
  0xb0   :  { %v492_v40 = vadd.f32 %v491_v39, %v490_v35 }
  0xb2   :  { %v493_v37 = vrot.slane %v492_v40, 2 }
  0xb4   :  { %v494_v44 = vadd.f32 %v493_v37, %v492_v40 }
  0xb6   :  { %v495_v48 = vrot.slane %v494_v44, 1 }
  0xb8   :  { %v496_v51 = vadd.f32 %v495_v48, %v494_v44 }
  0xc4   :  { %v461_v32 = vpop.xlane.xlu0 %460 }
  0xc5   :  { %v462_v29 = vrot.slane %v461_v32, 4 }
  0xc7   :  { %v463_v4 = vadd.f32 %v462_v29, %v461_v32 }
  0xc9   :  { %v464_v33 = vrot.slane %v463_v4, 2 }
  0xcb   :  { %v465_v34 = vadd.f32 %v464_v33, %v463_v4 }
  0xcd   :  { %v466_v36 = vrot.slane %v465_v34, 1 }
  0xcf   :  { %v467_v38 = vadd.f32 %v466_v36, %v465_v34 }
  0xd1   :  { %585 = vpush %v467_v38 }
 0x102   :  { %v476_v41 = vpop.xlane.xlu0 %475  ;;  %s586_s11 = spop %585 }
 0x103   :  { %v477_v42 = vrot.slane %v476_v41, 4  ;;  %v469_v52 = vstv %s586_s11 }
 0x104   :  { %v470_v53 = vmul.f32 0.5, %v469_v52 }
 0x105   :  { %v478_v43 = vadd.f32 %v477_v42, %v476_v41 }
 0x106   :  { %472 = vst.msk [vmem:[#allocation17] sm:$0x1] %vm471_vm2, %v470_v53 }
 0x107   :  { %v479_v45 = vrot.slane %v478_v43, 2  ;;  %523 = dma.vmem_to_hbm [thread:$0]  %s519_s0, 16, %s521_s6, [#allocation7]  }
 0x109   :  { %v480_v47 = vadd.f32 %v479_v45, %v478_v43 }
 0x10b   :  { %v481_v49 = vrot.slane %v480_v47, 1 }
 0x10d   :  { %v482_v50 = vadd.f32 %v481_v49, %v480_v47 }
 0x10f   :  { %587 = vpush %v482_v50 }
 0x110   :  { %589 = vpush %v496_v51 }
 0x140   :  { %s588_s17 = spop %587 }
 0x141   :  { %v484_v54 = vstv %s588_s17  ;;  %s590_s1 = spop %589 }
 0x142   :  { %v485_v55 = vmul.f32 0.0025, %v484_v54  ;;  %v498_v56 = vstv %s590_s1 }
 0x143   :  { %615 = vrsqrt.f32 %v498_v56  ;;  %vm506_vm3 = vcmp.eq.f32.partialorder %v498_v56, inf  ;;  %v509_v1 = vand.u32 2147483648, %v498_v56  ;;  %vm508_vm4 = vcmp.eq.f32.partialorder %v498_v56, 0.0 }
 0x144   :  { %486 = vst.msk [vmem:[#allocation18] sm:$0x1] %vm471_vm2, %v485_v55 }
 0x145   :  { %534 = dma.vmem_to_hbm [thread:$0]  %s530_s25, 16, %s532_s5, [#allocation19]  }
 0x149   :  { %v616_v57 = vpop.eup %615 }
 0x14a   :  { %v500_v58 = vmul.f32 %v616_v57, %v498_v56 }
 0x14c   :  { %v501_v59 = vmul.f32 %v616_v57, %v500_v58 }
 0x14e   :  { %v502_v60 = vmul.f32 0.5, %v501_v59 }
 0x150   :  { %v503_v61 = vsub.f32 1.5, %v502_v60 }
 0x152   :  { %v504_v62 = vmul.f32 %v616_v57, %v503_v61 }
 0x154   :  { %v505_v63 = vmul.f32 %v504_v62, %v498_v56 }
 0x156   :  { %v507_v3 = vsel %vm506_vm3, %v498_v56, %v505_v63 }
 0x157   :  { %v510_v5 = vsel %vm508_vm4, %v509_v1, %v507_v3 }
 0x158   :  { %v511_v6 = vmul.f32 0.5, %v510_v5 }
 0x15a   :  { %512 = vst.msk [vmem:[#allocation20] sm:$0x1] %vm471_vm2, %v511_v6 }
 0x15b   :  { %545 = dma.vmem_to_hbm [thread:$0]  %s541_s8, 16, %s543_s24, [#allocation19]  }
 0x15c   :  { %819 = dma.done.wait [#allocation7], 16  }
 0x15d   :  { %820 = vsyncadd [#allocation7], 4294967280 }
 0x15e   :  { %821 = dma.done.wait [#allocation19], 32  }
 0x15f   :  { %822 = vsyncadd [#allocation19], 4294967264 }
 0x160   :  { %558 = vsyncpa [#allocation6], 1 }
 0x161   :  { %559 = vsyncpa [#allocation13], 1 }
 0x162   :  { %560 = vsyncpa [#allocation16], 1 }
 0x163   :  { %561 = vsyncpa [#allocation7], 1 }
 0x164   :  { %562 = vsyncpa [#allocation19], 1 }
 0x165   :  { %563 = vsyncpa [#allocation8], 1 }
 0x166   :  { %564 = vsyncpa [#allocation10], 1 }

</bundles_post_ra>
